<compile_context>
chip_gen: v7x
topology: tpu7x:2x2x1
jax: 0.10.0
libtpu: 0.0.40
codegen_flags: <defaults>
</compile_context>

<pallas_src>
import jax
import jax.numpy as jnp
from jax import lax
from jax.experimental import pallas as pl
from jax.experimental.pallas import tpu as pltpu


class SiglipVisionConfig:
    def __init__(self, hidden_size=768, intermediate_size=3072, num_hidden_layers=12,
                 num_attention_heads=12, num_channels=3, image_size=512, patch_size=16,
                 layer_norm_eps=1e-06, attention_dropout=0.0, num_image_tokens=None,
                 **kwargs):
        self.hidden_size = hidden_size
        self.intermediate_size = intermediate_size
        self.num_hidden_layers = num_hidden_layers
        self.num_attention_heads = num_attention_heads
        self.num_channels = num_channels
        self.image_size = image_size
        self.patch_size = patch_size
        self.layer_norm_eps = layer_norm_eps
        self.attention_dropout = attention_dropout
        self.num_image_tokens = num_image_tokens


def _round_up(x, m):
    return ((x + m - 1) // m) * m


# ----------------------------------------------------------------------------
# Pallas kernel: one (tm, E_pad) output tile of  patches @ W + bias
#   patches_ref: [tm, K]    bf16  (rows over (b, oh, ow), cols over (c, ki, kj))
#   w_ref:       [K, E_pad] bf16  (VMEM-resident across the whole grid)
#   b_ref:       [1, E_pad] f32
#   out_ref:     [tm, E_pad] bf16 (f32 accumulation, bf16 store)
# ----------------------------------------------------------------------------
def _patch_embed_kernel(patches_ref, w_ref, b_ref, out_ref):
    acc = jnp.dot(patches_ref[...], w_ref[...], preferred_element_type=jnp.float32)
    out_ref[...] = (acc + b_ref[...]).astype(out_ref.dtype)


def patch_embedding_pallas(patches, w_ke, bias, *, tm=512):
    """patches: [M, K], w_ke: [K, E], bias: [E] -> [M, E] bf16."""
    M, K = patches.shape
    E = w_ke.shape[1]

    # Lane-pad E only to a multiple of 128; weight stays resident so tn == E_pad.
    E_pad = _round_up(E, 128)
    # bf16 packed tile is (16, 128): keep tm a multiple of 16 even at tiny M.
    tm = min(tm, _round_up(M, 16))
    M_pad = _round_up(M, tm)

    if M_pad != M:
        patches = jnp.pad(patches, ((0, M_pad - M), (0, 0)))
    if E_pad != E:
        w_ke = jnp.pad(w_ke, ((0, 0), (0, E_pad - E)))
        bias = jnp.pad(bias, (0, E_pad - E))

    # bf16 operands for the MXU; accumulation & bias stay f32 inside the kernel.
    patches = patches.astype(jnp.bfloat16)
    w_ke = w_ke.astype(jnp.bfloat16)
    bias2d = bias.reshape(1, E_pad).astype(jnp.float32)

    grid = (M_pad // tm,)

    # Per-step VMEM footprint (BlockSpec double-buffers each operand) + headroom,
    # capped at 64 MiB so the configuration also fits v7x's smaller VMEM.
    tile_bytes = (2 * tm * K * 2          # patch tile, bf16, double-buffered
                  + 2 * K * E_pad * 2     # resident weight, bf16 (x2 buffers)
                  + 2 * E_pad * 4         # bias, f32
                  + 2 * tm * E_pad * 2)   # output tile, bf16, double-buffered
    vmem_limit = min(64 * 1024 * 1024, int(tile_bytes) + (8 << 20))

    cost = pl.CostEstimate(
        flops=2 * M_pad * K * E_pad,
        transcendentals=0,
        bytes_accessed=(M_pad * K * 2 + K * E_pad * 2 + E_pad * 4 + M_pad * E_pad * 2),
    )

    out = pl.pallas_call(
        _patch_embed_kernel,
        out_shape=jax.ShapeDtypeStruct((M_pad, E_pad), jnp.bfloat16),
        grid=grid,
        in_specs=[
            pl.BlockSpec((tm, K), lambda i: (i, 0)),        # streamed over M
            pl.BlockSpec((K, E_pad), lambda i: (0, 0)),     # constant block: weight stays in VMEM
            pl.BlockSpec((1, E_pad), lambda i: (0, 0)),     # constant block: bias stays in VMEM
        ],
        out_specs=pl.BlockSpec((tm, E_pad), lambda i: (i, 0)),
        compiler_params=pltpu.CompilerParams(
            dimension_semantics=("parallel",),   # v7x dual-TC shards the M axis
            vmem_limit_bytes=int(vmem_limit),
        ),
        cost_estimate=cost,
    )(patches, w_ke, bias2d)

    return out[:M, :E]


# ----------------------------------------------------------------------------
# Parameter init (matches the shapes declared in VisionEmbeddings.__init__)
# ----------------------------------------------------------------------------
def init_vision_embeddings_params(config, key):
    p = config.patch_size
    C = config.num_channels
    num_patches = (config.image_size // p) ** 2
    embed_dim = num_patches                 # reference: self.embed_dim = self.num_patches
    k_w, k_b, k_pos = jax.random.split(key, 3)
    fan_in = C * p * p
    bound = 1.0 / float(jnp.sqrt(fan_in))
    conv_w = jax.random.uniform(k_w, (embed_dim, C, p, p), jnp.float32, -bound, bound)
    conv_b = jax.random.uniform(k_b, (embed_dim,), jnp.float32, -bound, bound)
    # position_embedding is declared in __init__ but unused by the reference forward.
    pos_emb = 0.02 * jax.random.normal(k_pos, (num_patches, embed_dim), jnp.float32)
    return {"conv_w": conv_w, "conv_b": conv_b, "pos_emb": pos_emb}


# ----------------------------------------------------------------------------
# VisionEmbeddings.forward
# ----------------------------------------------------------------------------
def vision_embeddings_forward(params, pixel_values, config, output_layout="NCHW"):
    B, C, H, W = pixel_values.shape
    p = config.patch_size
    Hp, Wp = H // p, W // p
    E = params["conv_w"].shape[0]
    K = C * p * p

    # bf16 cast BEFORE the im2col reshape/transpose halves the materialized
    # [M, K] intermediate's HBM traffic.
    # TODO(synk): fuse im2col into the kernel by tiling the NCHW input with a
    # BlockSpec over (b, patch-row) tiles to remove this extra HBM pass entirely.
    x = pixel_values.astype(jnp.bfloat16)
    patches = (x.reshape(B, C, Hp, p, Wp, p)
                .transpose(0, 2, 4, 1, 3, 5)
                .reshape(B * Hp * Wp, K))

    # Conv2d weight [E, C, p, p] -> [K, E]; one-time tiny transpose on a ~1.5 MB
    # array, so the kernel contracts the natural (K-major, E-lane) layout.
    w_ke = params["conv_w"].reshape(E, K).T

    out = patch_embedding_pallas(patches, w_ke, params["conv_b"])   # [B*P, E] bf16

    if output_layout == "tokens":
        return out.reshape(B, Hp * Wp, E)                 # what a transformer consumes
    # PyTorch Conv2d output layout (NCHW), matching the reference forward (bf16 pass).
    return out.reshape(B, Hp, Wp, E).transpose(0, 3, 1, 2)


if __name__ == "__main__":
    # Small, module-consistent shapes: image 32x32, patch 8 -> num_patches = embed_dim = 16.
    # (E=16 < 128 exercises the lane-padding path in the wrapper.)
    config = SiglipVisionConfig(hidden_size=32, intermediate_size=64,
                                num_hidden_layers=1, num_attention_heads=2,
                                num_channels=3, image_size=32, patch_size=8)

    key = jax.random.PRNGKey(0)
    k_in, k_params = jax.random.split(key)
    pixel_values = jax.random.normal(k_in, (2, config.num_channels,
                                            config.image_size, config.image_size),
                                     jnp.float32)
    params = init_vision_embeddings_params(config, k_params)

    out = vision_embeddings_forward(params, pixel_values, config)
    out = jax.block_until_ready(out)

    # Reference check against XLA's conv (same semantics as nn.Conv2d, NCHW/OIHW).
    ref = lax.conv_general_dilated(
        pixel_values, params["conv_w"],
        window_strides=(config.patch_size, config.patch_size),
        padding="VALID",
        dimension_numbers=("NCHW", "OIHW", "NCHW"),
    ) + params["conv_b"][None, :, None, None]

    assert out.shape == ref.shape, (out.shape, ref.shape)
    # bf16 MXU inputs + bf16 output with f32 accumulation -> loosened tolerance
    # vs. the f32 reference.
    diff = jnp.max(jnp.abs(out.astype(jnp.float32) - ref))
    assert jnp.allclose(out.astype(jnp.float32), ref, atol=5e-2, rtol=5e-2), float(diff)
    print("KERNEL_OK")
</pallas_src>

<mosaic_0001>
module attributes {stable_mosaic.version = 11 : i64} {
  func.func @_patch_embed_kernel(%arg0: i32, %arg1: memref<32x192xbf16, #tpu.memory_space<vmem>>, %arg2: memref<192x128xbf16, #tpu.memory_space<vmem>>, %arg3: memref<1x128xf32, #tpu.memory_space<vmem>>, %arg4: memref<32x128xbf16, #tpu.memory_space<vmem>>) attributes {dimension_semantics = [#tpu.dimension_semantics<parallel>], iteration_bounds = array<i64: 1>, scalar_prefetch = 0 : i64, scratch_operands = 0 : i64, tpu.core_type = #tpu.core_type<tc>, window_params = [{transform_indices = @transform_0, window_bounds = array<i64: 32, 192>}, {pipeline_mode = #tpu.pipeline_mode<synchronous>, transform_indices = @transform_1, window_bounds = array<i64: 192, 128>}, {pipeline_mode = #tpu.pipeline_mode<synchronous>, transform_indices = @transform_2, window_bounds = array<i64: 1, 128>}, {transform_indices = @transform_3, window_bounds = array<i64: 32, 128>}]} {
    %c0 = arith.constant 0 : index
    %c0_0 = arith.constant 0 : index
    %0 = vector.load %arg1[%c0, %c0_0] : memref<32x192xbf16, #tpu.memory_space<vmem>>, vector<32x192xbf16>
    %c0_1 = arith.constant 0 : index
    %c0_2 = arith.constant 0 : index
    %1 = vector.load %arg2[%c0_1, %c0_2] : memref<192x128xbf16, #tpu.memory_space<vmem>>, vector<192x128xbf16>
    %cst = arith.constant dense<0.000000e+00> : vector<32x128xf32>
    %2 = tpu.matmul %0, %1, %cst {dimension_numbers = #tpu.dot_dimension_numbers<[1], [0], [0], [1], [0, 0, 1, 1], [], []>} : vector<32x192xbf16>, vector<192x128xbf16>, vector<32x128xf32> -> vector<32x128xf32>
    %c0_3 = arith.constant 0 : index
    %c0_4 = arith.constant 0 : index
    %3 = vector.load %arg3[%c0_3, %c0_4] : memref<1x128xf32, #tpu.memory_space<vmem>>, vector<1x128xf32>
    %4 = vector.broadcast %3 : vector<1x128xf32> to vector<32x128xf32>
    %5 = arith.addf %2, %4 : vector<32x128xf32>
    %6 = arith.truncf %5 : vector<32x128xf32> to vector<32x128xbf16>
    %c0_5 = arith.constant 0 : index
    %c0_6 = arith.constant 0 : index
    %7 = vector.load %arg4[%c0_5, %c0_6] : memref<32x128xbf16, #tpu.memory_space<vmem>>, vector<32x128xbf16>
    tpu.vector_store %arg4[%c0_5, %c0_6], %6 {strides = array<i32>} : memref<32x128xbf16, #tpu.memory_space<vmem>>, vector<32x128xbf16>,
    return
  }
  func.func @transform_0(%arg0: i32) -> (i32, i32) {
    %c0_i32 = arith.constant 0 : i32
    %c0_i32_0 = arith.constant 0 : i32
    return %arg0, %c0_i32 : i32, i32
  }
  func.func @transform_1(%arg0: i32) -> (i32, i32) {
    %c0_i32 = arith.constant 0 : i32
    %c0_i32_0 = arith.constant 0 : i32
    %c0_i32_1 = arith.constant 0 : i32
    return %c0_i32, %c0_i32_0 : i32, i32
  }
  func.func @transform_2(%arg0: i32) -> (i32, i32) {
    %c0_i32 = arith.constant 0 : i32
    %c0_i32_0 = arith.constant 0 : i32
    %c0_i32_1 = arith.constant 0 : i32
    return %c0_i32, %c0_i32_0 : i32, i32
  }
  func.func @transform_3(%arg0: i32) -> (i32, i32) {
    %c0_i32 = arith.constant 0 : i32
    %c0_i32_0 = arith.constant 0 : i32
    return %arg0, %c0_i32 : i32, i32
  }
}

</mosaic_0001>

<bundles_post_ra>
// kernel: tpu_custom_call.1
= control target key start
LH: loop header
LB: loop body
LE: loop exit
PB: predicated region body
PF: predicated region fallthrough
CT: control target
= control target key end

     0   :  { %8 = vsyncpa [#allocation3], 0  ;;  %s496_s0 = inlined_call_operand.hbm [shape: bf16[32,192], index: 0, kind: input, shape index: {}]   ;;  %s497_s1 = inlined_call_operand.hbm [shape: bf16[192,128], index: 1, kind: input, shape index: {}]   ;;  %s498_s2 = inlined_call_operand.vmem [shape: f32[1,128], index: 2, kind: input, shape index: {}]   ;;  %s499_s3 = inlined_call_operand.hbm [shape: bf16[32,128], index: 3, kind: output, shape index: {}]  }
   0x1   :  { %9 = vsyncpa [#allocation6], 0 }
   0x2   :  { %10 = vsyncpa [#allocation4], 0  ;;  %s423_s12 = smov [#allocation2]   ;;  %s351_s16 = scalar_lea.hbm %s496_s0, 512 }
   0x3   :  { %s16_s13 = sshll.u32 %s423_s12, 4  ;;  %p352_p0 = scmp.ne.s32.totalorder %s496_s0, %s351_s16  ;;  %s17_s13 = int_to_ptr.vmem [resolvable:$true] %s16_s13 }
   0x4   :  { %p355_p1 = scmp.lt.u32.totalorder %s351_s16, %s496_s0 }
   0x6   :  { %p357_p2 = pnand %p355_p1, %p352_p0 }
   0x8   :  { %360 = shalt.err (!%p357_p2)
}
   0x9   :  { %s361_s21 = scalar_lea.vmem %s17_s13, 512  ;;  %p366_p4 = scmp.lt.s32.totalorder %s17_s13, %s17_s13 }
   0xa   :  { %p362_p3 = scmp.ne.s32.totalorder %s17_s13, %s361_s21  ;;  %p367_p5 = scmp.lt.s32.totalorder %s361_s21, %s361_s21 }
   0xc   :  { %p368_p6 = por %p367_p5, %p366_p4 }
   0xe   :  { %p369_p7 = pnand %p368_p6, %p362_p3 }
  0x10   :  { %372 = shalt.err (!%p369_p7)
}
  0x11   :  { %s424_s22 = smov 128   ;;  %s425_s23 = smov 8  }
  0x12   :  { %22 = dma.hbm_to_vmem [thread:$0]  %s496_s0, 512, %s17_s13, [#allocation3], %s424_s22, %s424_s22, %s425_s23  }
  0x13   :  { %s426_s26 = smov [#allocation5]   ;;  %s373_s30 = scalar_lea.hbm %s497_s1, 1536 }
  0x14   :  { %s28_s27 = sshll.u32 %s426_s26, 4  ;;  %p374_p8 = scmp.ne.s32.totalorder %s497_s1, %s373_s30  ;;  %s29_s27 = int_to_ptr.vmem [resolvable:$true] %s28_s27 }
  0x15   :  { %p377_p9 = scmp.lt.u32.totalorder %s373_s30, %s497_s1 }
  0x17   :  { %p379_p10 = pnand %p377_p9, %p374_p8 }
  0x19   :  { %382 = shalt.err (!%p379_p10)
}
  0x1a   :  { %s383_s8 = scalar_lea.vmem %s29_s27, 1536  ;;  %p388_p12 = scmp.lt.s32.totalorder %s29_s27, %s29_s27 }
  0x1b   :  { %p384_p11 = scmp.ne.s32.totalorder %s29_s27, %s383_s8  ;;  %p389_p13 = scmp.lt.s32.totalorder %s383_s8, %s383_s8 }
  0x1d   :  { %p390_p0 = por %p389_p13, %p388_p12 }
  0x1f   :  { %p391_p1 = pnand %p390_p0, %p384_p11 }
  0x21   :  { %394 = shalt.err (!%p391_p1)
}
  0x22   :  { %s427_s0 = smov 64   ;;  %s428_s9 = smov 4  }
  0x23   :  { %34 = dma.hbm_to_vmem [thread:$0]  %s497_s1, 1536, %s29_s27, [#allocation6], %s427_s0, %s427_s0, %s428_s9  }
  0x24   :  { %417 = dma.done.wait [#allocation3], 512  }
  0x25   :  { %418 = vsyncadd [#allocation3], 4294966784 }
  0x26   :  { %419 = dma.done.wait [#allocation6], 1536  }
  0x27   :  { %420 = vsyncadd [#allocation6], 4294965760  ;;  %v429_v0 = vmov 0   ;;  %v333_v1 = vld [vmem:[#allocation5] sm:$0xff]   ;;  %v334_v2 = vld [vmem:[#allocation5 + $0x8] sm:$0xff]   ;;  %vm169_vm0 = vcmask 523264  }
  0x28   :  { %176 = vmatprep.subr.bf16.mxu0 %v429_v0  ;;  %301 = vmatprep.subr.bf16.mxu1 %v429_v0  ;;  %v335_v3 = vld [vmem:[#allocation5 + $0x10] sm:$0xff]   ;;  %v336_v4 = vld [vmem:[#allocation5 + $0x18] sm:$0xff]   ;;  %v347_v5 = vld [vmem:[#allocation2 + $0x4] ss:$8 sps:$4 sm:$0xff]   ;;  %s430_s13 = smov [#allocation7]  }
  0x29   :  { %177 = vmatpush1.bf16.msra.mxu0 %v333_v1  ;;  %313 = vmatpush1.bf16.msra.mxu1 %v333_v1  ;;  %v337_v6 = vld [vmem:[#allocation5 + $0x20] sm:$0xff]   ;;  %v350_v7 = vld [vmem:[#allocation2 + $0x14] ss:$8 sps:$4 sm:$0xff]   ;;  %v338_v8 = vld [vmem:[#allocation5 + $0x28] sm:$0xff]   ;;  %s250_s14 = sshll.u32 %s430_s13, 4  ;;  %s251_s14 = int_to_ptr.vmem [resolvable:$true] %s250_s14 }
  0x2a   :  { %178 = vmatprep.subr.bf16.mxu0 %v429_v0  ;;  %302 = vmatprep.subr.bf16.mxu1 %v429_v0  ;;  %v339_v9 = vld [vmem:[#allocation5 + $0x30] sm:$0xff]   ;;  %v340_v10 = vld [vmem:[#allocation5 + $0x38] sm:$0xff]   ;;  %v341_v11 = vld [vmem:[#allocation5 + $0x40] sm:$0xff]   ;;  %p400_p3 = scmp.lt.s32.totalorder %s251_s14, %s251_s14 }
  0x2b   :  { %280 = vmatprep.mubr.msk.bf16.mxu0 %vm169_vm0, %v347_v5  ;;  %281 = vmatprep.mubr.msk.bf16.mxu1 %vm169_vm0, %v350_v7  ;;  %v342_v12 = vld [vmem:[#allocation5 + $0x48] sm:$0xff]   ;;  %v343_v13 = vld [vmem:[#allocation5 + $0x50] sm:$0xff]   ;;  %v344_v14 = vld [vmem:[#allocation5 + $0x58] sm:$0xff]  }
  0x2c   :  { %v345_v15 = vld [vmem:[#allocation2] ss:$8 sps:$4 sm:$0xff]   ;;  %v348_v16 = vld [vmem:[#allocation2 + $0x10] ss:$8 sps:$4 sm:$0xff]  }
  0x2d   :  { %179 = vmatpush1.bf16.msra.mxu0 %v334_v2  ;;  %314 = vmatpush1.bf16.msra.mxu1 %v334_v2  ;;  %v263_v17 = vld [vmem:[%s498_s2] ss:$0 sm:$0xff]  ;;  %s395_s2 = scalar_lea.vmem %s251_s14, 256 }
  0x2e   :  { %180 = vmatprep.subr.bf16.mxu0 %v429_v0  ;;  %303 = vmatprep.subr.bf16.mxu1 %v429_v0  ;;  %p396_p2 = scmp.ne.s32.totalorder %s251_s14, %s395_s2  ;;  %p401_p4 = scmp.lt.s32.totalorder %s395_s2, %s395_s2 }
  0x30   :  { %p402_p5 = por %p401_p4, %p400_p3 }
  0x31   :  { %181 = vmatpush1.bf16.msra.mxu0 %v335_v3  ;;  %315 = vmatpush1.bf16.msra.mxu1 %v335_v3 }
  0x32   :  { %182 = vmatprep.subr.bf16.mxu0 %v429_v0  ;;  %304 = vmatprep.subr.bf16.mxu1 %v429_v0  ;;  %p403_p6 = pnand %p402_p5, %p396_p2 }
  0x35   :  { %183 = vmatpush1.bf16.msra.mxu0 %v336_v4  ;;  %316 = vmatpush1.bf16.msra.mxu1 %v336_v4 }
  0x36   :  { %184 = vmatprep.subr.bf16.mxu0 %v429_v0  ;;  %305 = vmatprep.subr.bf16.mxu1 %v429_v0 }
  0x39   :  { %185 = vmatpush1.bf16.msra.mxu0 %v337_v6  ;;  %317 = vmatpush1.bf16.msra.mxu1 %v337_v6 }
  0x3a   :  { %186 = vmatprep.subr.bf16.mxu0 %v429_v0  ;;  %306 = vmatprep.subr.bf16.mxu1 %v429_v0 }
  0x3d   :  { %187 = vmatpush1.bf16.msra.mxu0 %v338_v8  ;;  %318 = vmatpush1.bf16.msra.mxu1 %v338_v8 }
  0x3e   :  { %188 = vmatprep.subr.bf16.mxu0 %v429_v0  ;;  %307 = vmatprep.subr.bf16.mxu1 %v429_v0 }
  0x41   :  { %189 = vmatpush1.bf16.msra.mxu0 %v339_v9  ;;  %319 = vmatpush1.bf16.msra.mxu1 %v339_v9 }
  0x42   :  { %190 = vmatprep.subr.bf16.mxu0 %v429_v0  ;;  %308 = vmatprep.subr.bf16.mxu1 %v429_v0 }
  0x45   :  { %191 = vmatpush1.bf16.msra.mxu0 %v340_v10  ;;  %320 = vmatpush1.bf16.msra.mxu1 %v340_v10 }
  0x46   :  { %192 = vmatprep.subr.bf16.mxu0 %v429_v0  ;;  %309 = vmatprep.subr.bf16.mxu1 %v429_v0 }
  0x49   :  { %193 = vmatpush1.bf16.msra.mxu0 %v341_v11  ;;  %321 = vmatpush1.bf16.msra.mxu1 %v341_v11 }
  0x4a   :  { %194 = vmatprep.subr.bf16.mxu0 %v429_v0  ;;  %310 = vmatprep.subr.bf16.mxu1 %v429_v0 }
  0x4d   :  { %195 = vmatpush1.bf16.msra.mxu0 %v342_v12  ;;  %322 = vmatpush1.bf16.msra.mxu1 %v342_v12 }
  0x4e   :  { %196 = vmatprep.subr.bf16.mxu0 %v429_v0  ;;  %311 = vmatprep.subr.bf16.mxu1 %v429_v0 }
  0x51   :  { %197 = vmatpush1.bf16.msra.mxu0 %v343_v13  ;;  %323 = vmatpush1.bf16.msra.mxu1 %v343_v13 }
  0x52   :  { %198 = vmatprep.subr.bf16.mxu0 %v429_v0  ;;  %312 = vmatprep.subr.bf16.mxu1 %v429_v0 }
  0x55   :  { %199 = vmatpush1.bf16.msra.mxu0 %v344_v14  ;;  %324 = vmatpush1.bf16.msra.mxu1 %v344_v14 }
  0x58   :  { %209 = vmatmul.mubr.bf16.vlgmr.msra.gmra.mrb[0].mxu0 %v345_v15  ;;  %217 = vmatmul.mubr.bf16.vlgmr.msra.gmra.mrb[0].mxu1 %v348_v16 }
 0x12b   :  { %v210_v18 = vpop.f32.mrb[0].mxu0  ;;  %v218_v19 = vpop.f32.mrb[0].mxu1 }
 0x12c   :  { %v212_v20 = vpop.f32.mrb[1].mxu0  ;;  %v220_v21 = vpop.f32.mrb[1].mxu1  ;;  %v211_v24 = vadd.f32 %v263_v17, %v210_v18  ;;  %v219_v25 = vadd.f32 %v263_v17, %v218_v19 }
 0x12d   :  { %v213_v22 = vpop.f32.mrb[2].mxu0  ;;  %v221_v23 = vpop.f32.mrb[2].mxu1 }
 0x12e   :  { %v214_v26 = vadd.f32 %v263_v17, %v213_v22  ;;  %v222_v27 = vadd.f32 %v263_v17, %v221_v23  ;;  %v215_v28 = vpop.f32.mrb[3].mxu0  ;;  %v223_v29 = vpop.f32.mrb[3].mxu1 }
 0x130   :  { %v293_v30 = vpack.c.bf16 %v214_v26, %v211_v24  ;;  %v298_v31 = vpack.c.bf16 %v222_v27, %v219_v25 }
 0x132   :  { %294 = vst [vmem:[#allocation7] sm:$0xff] %v293_v30   ;;  %300 = vst [vmem:[#allocation7 + $0x8] sm:$0xff] %v298_v31  }
 0x133   :  { %406 = shalt.err (!%p403_p6)
}
 0x134   :  { %s407_s17 = scalar_lea.hbm %s499_s3, 256 }
 0x135   :  { %p408_p7 = scmp.ne.s32.totalorder %s499_s3, %s407_s17  ;;  %p411_p8 = scmp.lt.u32.totalorder %s407_s17, %s499_s3 }
 0x137   :  { %p413_p9 = pnand %p411_p8, %p408_p7 }
 0x139   :  { %416 = shalt.err (!%p413_p9)
}
 0x13a   :  { %256 = dma.vmem_to_hbm [thread:$0]  %s251_s14, 256, %s499_s3, [#allocation4], %s427_s0, %s427_s0, %s428_s9  }
 0x13b   :  { %421 = dma.done.wait [#allocation4], 256  }
 0x13c   :  { %422 = vsyncadd [#allocation4], 4294967040 }
 0x13d   :  { %260 = vsyncpa [#allocation3], 1 }
 0x13e   :  { %261 = vsyncpa [#allocation6], 1 }
 0x13f   :  { %262 = vsyncpa [#allocation4], 1 }

</bundles_post_ra>
